<compile_context>
chip_gen: v7x
topology: tpu7x:2x2x1
jax: 0.10.0
libtpu: 0.0.40
codegen_flags: <defaults>
</compile_context>

<pallas_src>
import functools
import math

import numpy as np
import jax
import jax.numpy as jnp
from jax.experimental import pallas as pl
from jax.experimental.pallas import tpu as pltpu

LN_EPS = 1e-5                       # PyTorch nn.LayerNorm default
_INV_SQRT2 = 0.7071067811865476
_SQRT_2_OVER_PI = 0.7978845608028654


def _cdiv(a, b):
    return -(-a // b)


def _round_up(a, b):
    return (a + b - 1) // b * b


def _gelu(x, approximate):
    if approximate:
        # tanh approximation -> transcendental goes to the EUP slot (free vs. saturated VALU).
        inner = _SQRT_2_OVER_PI * (x + 0.044715 * x * x * x)
        return 0.5 * x * (1.0 + jnp.tanh(inner))
    # exact erf formulation == nn.GELU() default
    return 0.5 * x * (1.0 + jax.lax.erf(x * _INV_SQRT2))


def _layer_norm(z, gamma, beta):
    mean = jnp.mean(z, axis=-1, keepdims=True)
    var = jnp.mean((z - mean) * (z - mean), axis=-1, keepdims=True)
    z_hat = (z - mean) * jax.lax.rsqrt(var + LN_EPS)
    return z_hat * gamma + beta


# --------------------------------------------------------------------------------------------
# Path A: weights resident in VMEM (single-buffered), one grid axis over row tiles.
# --------------------------------------------------------------------------------------------
def ffn_resident_kernel(x_ref, w1_ref, b1_ref, w2_ref, b2_ref, gamma_ref, beta_ref, o_ref,
                        *, approximate):
    x = x_ref[...]                                  # native IO dtype (f32 or bf16)
    x_f32 = x.astype(jnp.float32)
    mm_dtype = w1_ref.dtype                         # MXU operand dtype (bf16 default)

    # w_1(x) -> GELU     (dropout = identity in eval)
    h = jnp.dot(x.astype(mm_dtype), w1_ref[...],
                preferred_element_type=jnp.float32) + b1_ref[...]
    h = _gelu(h, approximate)

    # w_2(h)             (dropout = identity) + residual
    y = jnp.dot(h.astype(mm_dtype), w2_ref[...],
                preferred_element_type=jnp.float32) + b2_ref[...]
    z = y + x_f32

    # LayerNorm over d_model (f32)
    o_ref[...] = _layer_norm(z, gamma_ref[...], beta_ref[...]).astype(o_ref.dtype)


# --------------------------------------------------------------------------------------------
# Path B: hidden-dim (k) tiled fallback for large d_model — weights streamed, f32 accumulator.
# --------------------------------------------------------------------------------------------
def ffn_ktiled_kernel(x_ref, w1_ref, b1_ref, w2_ref, b2_ref, gamma_ref, beta_ref, o_ref,
                      acc_ref, *, approximate):
    k = pl.program_id(1)

    @pl.when(k == 0)
    def _():
        acc_ref[...] = jnp.zeros_like(acc_ref)

    mm_dtype = w1_ref.dtype
    x = x_ref[...]                                   # full-width row tile, resident across k

    # hidden block: GELU(x @ w1[:, kb] + b1[kb])
    h_blk = jnp.dot(x.astype(mm_dtype), w1_ref[...],
                    preferred_element_type=jnp.float32) + b1_ref[...]
    h_blk = _gelu(h_blk, approximate)

    # accumulate partial second matmul: acc += h_blk @ w2[kb, :]
    acc_ref[...] += jnp.dot(h_blk.astype(mm_dtype), w2_ref[...],
                            preferred_element_type=jnp.float32)

    @pl.when(k == pl.num_programs(1) - 1)
    def _():
        z = acc_ref[...] + b2_ref[...] + x.astype(jnp.float32)
        o_ref[...] = _layer_norm(z, gamma_ref[...], beta_ref[...]).astype(o_ref.dtype)


# --------------------------------------------------------------------------------------------
# Wrapper
# --------------------------------------------------------------------------------------------
@functools.partial(jax.jit, static_argnames=("tm", "tk", "matmul_dtype", "gelu_approximate",
                                             "weights_resident"))
def position_wise_ffn(x, w1, b1, w2, b2, gamma, beta, *, tm=512, tk=None,
                      matmul_dtype=jnp.bfloat16, gelu_approximate=False,
                      weights_resident=None):
    """x: [..., D].  w1/w2: [D, D] stored as (in, out) == PyTorch W.T."""
    D = x.shape[-1]
    lead = x.shape[:-1]
    N = math.prod(lead) if lead else 1

    io_dtype = x.dtype
    io_itemsize = np.dtype(io_dtype).itemsize
    mm_itemsize = np.dtype(matmul_dtype).itemsize
    granule = 16 if io_itemsize == 2 else 8          # bf16 sublane packing -> 16-row granules

    tm = max(granule, _round_up(int(tm), granule))
    if N <= tm:
        tm_eff = _round_up(N, granule)               # single (possibly masked) tile
    else:
        # >= 2 parallel grid steps so both v7x TensorCores get work; keep MXU-friendly rows.
        tm_eff = min(tm, max(granule, _round_up(_cdiv(N, 2), 128)))
    num_row_tiles = _cdiv(N, tm_eff)                 # ragged last block is masked by Pallas

    x2 = x.reshape(N, D)                             # free, row-major view; no pad, no upcast
    w1c = w1.astype(matmul_dtype)
    w2c = w2.astype(matmul_dtype)
    b1r = b1.reshape(1, D).astype(jnp.float32)
    b2r = b2.reshape(1, D).astype(jnp.float32)
    gr = gamma.reshape(1, D).astype(jnp.float32)
    br = beta.reshape(1, D).astype(jnp.float32)

    # VMEM budget: ~85% of physical (v7x: ~54 MiB of 64; v5e/v6e: ~108 MiB of 128).
    try:
        vmem_cap = int(pltpu.get_tpu_info().vmem_capacity_bytes)
    except Exception:
        vmem_cap = 64 << 20
    vmem_ceiling = int(0.85 * vmem_cap)

    # Resident-path footprint estimate: single-buffered weights + double-buffered x/out tiles
    # + f32 temporaries (h / y / z / z_hat headroom) + small params.
    w_res_bytes = 2 * D * D * mm_itemsize
    io_res_bytes = 2 * 2 * tm_eff * D * io_itemsize
    tmp_res_bytes = 4 * tm_eff * D * 4
    small_bytes = 8 * D * 4
    resident_bytes = w_res_bytes + io_res_bytes + tmp_res_bytes + small_bytes

    if weights_resident is None:
        weights_resident = resident_bytes <= vmem_ceiling

    out_shape = jax.ShapeDtypeStruct((N, D), io_dtype)

    if weights_resident:
        vmem_limit = min(vmem_ceiling,
                         max(32 << 20, int(1.25 * resident_bytes) + (2 << 20)))

        def const1(shape):
            # Constant index_map; single buffer halves the resident footprint.
            return pl.BlockSpec(shape, lambda i: (0, 0), pipeline_mode=pl.Buffered(1))

        out = pl.pallas_call(
            functools.partial(ffn_resident_kernel, approximate=gelu_approximate),
            out_shape=out_shape,
            grid=(num_row_tiles,),
            in_specs=[
                pl.BlockSpec((tm_eff, D), lambda i: (i, 0)),   # x row tile (double-buffered)
                const1((D, D)),                                # w1 (resident)
                const1((1, D)),                                # b1
                const1((D, D)),                                # w2 (resident)
                const1((1, D)),                                # b2
                const1((1, D)),                                # gamma
                const1((1, D)),                                # beta
            ],
            out_specs=pl.BlockSpec((tm_eff, D), lambda i: (i, 0)),
            compiler_params=pltpu.CompilerParams(
                dimension_semantics=("parallel",),
                vmem_limit_bytes=vmem_limit,
            ),
        )(x2, w1c, b1r, w2c, b2r, gr, br)
    else:
        # Hidden-dim tiled fallback: stream w1 column blocks / w2 row blocks, accumulate in f32.
        if tk is not None:
            tk_eff = int(tk)
        else:
            tk_eff = next((c for c in (512, 256, 128) if D % c == 0), D)
        if D % tk_eff != 0:
            # TODO(synk): ragged hidden-dim tiling would need explicit weight padding.
            tk_eff = D
        nk = D // tk_eff

        w_blk_bytes = 2 * 2 * (D * tk_eff) * mm_itemsize      # w1 + w2 blocks, double-buffered
        xo_bytes = 2 * 2 * tm_eff * D * io_itemsize
        acc_bytes = tm_eff * D * 4
        tmp_bytes = 3 * tm_eff * max(D, tk_eff) * 4
        kt_bytes = w_blk_bytes + xo_bytes + acc_bytes + tmp_bytes + small_bytes
        vmem_limit = min(vmem_ceiling,
                         max(32 << 20, int(1.25 * kt_bytes) + (2 << 20)))

        def const2(shape):
            return pl.BlockSpec(shape, lambda i, k: (0, 0), pipeline_mode=pl.Buffered(1))

        out = pl.pallas_call(
            functools.partial(ffn_ktiled_kernel, approximate=gelu_approximate),
            out_shape=out_shape,
            grid=(num_row_tiles, nk),
            in_specs=[
                pl.BlockSpec((tm_eff, D), lambda i, k: (i, 0)),     # x row tile (resident over k)
                pl.BlockSpec((D, tk_eff), lambda i, k: (0, k)),     # w1 column block (streamed)
                pl.BlockSpec((1, tk_eff), lambda i, k: (0, k)),     # b1 block
                pl.BlockSpec((tk_eff, D), lambda i, k: (k, 0)),     # w2 row block (streamed)
                const2((1, D)),                                     # b2
                const2((1, D)),                                     # gamma
                const2((1, D)),                                     # beta
            ],
            out_specs=pl.BlockSpec((tm_eff, D), lambda i, k: (i, 0)),
            scratch_shapes=[pltpu.VMEM((tm_eff, D), jnp.float32)],
            compiler_params=pltpu.CompilerParams(
                dimension_semantics=("parallel", "arbitrary"),
                vmem_limit_bytes=vmem_limit,
            ),
        )(x2, w1c, b1r, w2c, b2r, gr, br)

    return out.reshape(*lead, D)


def reference_ffn(x, w1, b1, w2, b2, gamma, beta, *, gelu_approximate=False):
    xf = x.astype(jnp.float32)
    h = _gelu(jnp.einsum("...d,de->...e", xf, w1) + b1, gelu_approximate)
    y = jnp.einsum("...d,de->...e", h, w2) + b2
    z = y + xf
    return _layer_norm(z, gamma, beta)


if __name__ == "__main__":
    key = jax.random.PRNGKey(0)

    def make_params(k, D):
        k1, k2, k3, k4 = jax.random.split(k, 4)
        # nn.Linear(d_model, d_model)-style init; weights stored as (in, out) == W.T.
        scale = 1.0 / math.sqrt(D)
        w1 = jax.random.uniform(k1, (D, D), jnp.float32, -scale, scale)
        b1 = jax.random.uniform(k2, (D,), jnp.float32, -scale, scale)
        w2 = jax.random.uniform(k3, (D, D), jnp.float32, -scale, scale)
        b2 = jax.random.uniform(k4, (D,), jnp.float32, -scale, scale)
        gamma = jnp.ones((D,), jnp.float32)
        beta = jnp.zeros((D,), jnp.float32)
        return w1, b1, w2, b2, gamma, beta

    kx1, kp1, kx2, kp2 = jax.random.split(key, 4)

    # Case 1: tiny N (single masked tile), f32 MXU operands -> tight numeric match.
    B, S, D = 2, 8, 128
    x = jax.random.normal(kx1, (B, S, D), jnp.float32)
    params = make_params(kp1, D)
    out = jax.block_until_ready(position_wise_ffn(x, *params, matmul_dtype=jnp.float32))
    ref = reference_ffn(x, *params)
    assert out.shape == (B, S, D)
    assert jnp.allclose(out, ref, atol=1e-3, rtol=1e-3), float(jnp.max(jnp.abs(out - ref)))

    # Case 2: N=384 with tm=256 -> 2 row tiles, ragged (masked) last block; default bf16 MXU.
    B, S, D = 4, 96, 256
    x = jax.random.normal(kx2, (B, S, D), jnp.float32)
    params = make_params(kp2, D)
    ref = reference_ffn(x, *params)
    out = jax.block_until_ready(position_wise_ffn(x, *params, tm=256))
    assert out.shape == (B, S, D)
    assert bool(jnp.all(jnp.isfinite(out)))
    assert jnp.allclose(out, ref, atol=5e-2, rtol=5e-2), float(jnp.max(jnp.abs(out - ref)))

    # Case 3: bf16 activation IO kept end-to-end (no wrapper upcast), bf16 MXU.
    xb = x.astype(jnp.bfloat16)
    out_bf = jax.block_until_ready(position_wise_ffn(xb, *params, tm=256))
    assert out_bf.dtype == jnp.bfloat16
    err_bf = float(jnp.max(jnp.abs(out_bf.astype(jnp.float32) - ref)))
    assert jnp.allclose(out_bf.astype(jnp.float32), ref, atol=1.5e-1, rtol=1.5e-1), err_bf

    # Case 4: forced hidden-dim-tiled fallback (k accumulation over 2 blocks), f32 MXU (tight).
    out_kt = jax.block_until_ready(
        position_wise_ffn(x, *params, tm=256, matmul_dtype=jnp.float32,
                          weights_resident=False, tk=128))
    assert jnp.allclose(out_kt, ref, atol=1e-3, rtol=1e-3), \
        float(jnp.max(jnp.abs(out_kt - ref)))

    # Case 5: tanh-approximate GELU (EUP-routed) vs. a matching approximate reference.
    out_ap = jax.block_until_ready(
        position_wise_ffn(x, *params, tm=256, matmul_dtype=jnp.float32,
                          gelu_approximate=True))
    ref_ap = reference_ffn(x, *params, gelu_approximate=True)
    assert jnp.allclose(out_ap, ref_ap, atol=1e-3, rtol=1e-3), \
        float(jnp.max(jnp.abs(out_ap - ref_ap)))

    print("KERNEL_OK")
</pallas_src>

<mosaic_0001>
module attributes {stable_mosaic.version = 11 : i64} {
  func.func @ffn_resident_kernel(%arg0: i32, %arg1: memref<16x128xf32, #tpu.memory_space<vmem>>, %arg2: memref<128x128xf32, #tpu.memory_space<vmem>>, %arg3: memref<1x128xf32, #tpu.memory_space<vmem>>, %arg4: memref<128x128xf32, #tpu.memory_space<vmem>>, %arg5: memref<1x128xf32, #tpu.memory_space<vmem>>, %arg6: memref<1x128xf32, #tpu.memory_space<vmem>>, %arg7: memref<1x128xf32, #tpu.memory_space<vmem>>, %arg8: memref<16x128xf32, #tpu.memory_space<vmem>>) attributes {dimension_semantics = [#tpu.dimension_semantics<parallel>], iteration_bounds = array<i64: 1>, scalar_prefetch = 0 : i64, scratch_operands = 0 : i64, tpu.core_type = #tpu.core_type<tc>, window_params = [{transform_indices = @transform_0, window_bounds = array<i64: 16, 128>}, {pipeline_mode = #tpu.pipeline_mode<synchronous>, transform_indices = @transform_1, window_bounds = array<i64: 128, 128>}, {pipeline_mode = #tpu.pipeline_mode<synchronous>, transform_indices = @transform_2, window_bounds = array<i64: 1, 128>}, {pipeline_mode = #tpu.pipeline_mode<synchronous>, transform_indices = @transform_3, window_bounds = array<i64: 128, 128>}, {pipeline_mode = #tpu.pipeline_mode<synchronous>, transform_indices = @transform_4, window_bounds = array<i64: 1, 128>}, {pipeline_mode = #tpu.pipeline_mode<synchronous>, transform_indices = @transform_5, window_bounds = array<i64: 1, 128>}, {pipeline_mode = #tpu.pipeline_mode<synchronous>, transform_indices = @transform_6, window_bounds = array<i64: 1, 128>}, {transform_indices = @transform_7, window_bounds = array<i64: 16, 128>}]} {
    %c0 = arith.constant 0 : index
    %c0_0 = arith.constant 0 : index
    %0 = vector.load %arg1[%c0, %c0_0] : memref<16x128xf32, #tpu.memory_space<vmem>>, vector<16x128xf32>
    %c0_1 = arith.constant 0 : index
    %c0_2 = arith.constant 0 : index
    %1 = vector.load %arg2[%c0_1, %c0_2] : memref<128x128xf32, #tpu.memory_space<vmem>>, vector<128x128xf32>
    %cst = arith.constant dense<0.000000e+00> : vector<16x128xf32>
    %2 = tpu.matmul %0, %1, %cst {dimension_numbers = #tpu.dot_dimension_numbers<[1], [0], [0], [1], [0, 0, 1, 1], [], []>} : vector<16x128xf32>, vector<128x128xf32>, vector<16x128xf32> -> vector<16x128xf32>
    %c0_3 = arith.constant 0 : index
    %c0_4 = arith.constant 0 : index
    %3 = vector.load %arg3[%c0_3, %c0_4] : memref<1x128xf32, #tpu.memory_space<vmem>>, vector<1x128xf32>
    %4 = vector.broadcast %3 : vector<1x128xf32> to vector<16x128xf32>
    %5 = arith.addf %2, %4 : vector<16x128xf32>
    %cst_5 = arith.constant 5.000000e-01 : f32
    %6 = vector.broadcast %cst_5 : f32 to vector<16x128xf32>
    %7 = arith.mulf %6, %5 : vector<16x128xf32>
    %cst_6 = arith.constant 0.707106769 : f32
    %8 = vector.broadcast %cst_6 : f32 to vector<16x128xf32>
    %9 = arith.mulf %5, %8 : vector<16x128xf32>
    %10 = math.erf %9 : vector<16x128xf32>
    %cst_7 = arith.constant 1.000000e+00 : f32
    %11 = vector.broadcast %cst_7 : f32 to vector<16x128xf32>
    %12 = arith.addf %11, %10 : vector<16x128xf32>
    %13 = arith.mulf %7, %12 : vector<16x128xf32>
    %c0_8 = arith.constant 0 : index
    %c0_9 = arith.constant 0 : index
    %14 = vector.load %arg4[%c0_8, %c0_9] : memref<128x128xf32, #tpu.memory_space<vmem>>, vector<128x128xf32>
    %cst_10 = arith.constant dense<0.000000e+00> : vector<16x128xf32>
    %15 = tpu.matmul %13, %14, %cst_10 {dimension_numbers = #tpu.dot_dimension_numbers<[1], [0], [0], [1], [0, 0, 1, 1], [], []>} : vector<16x128xf32>, vector<128x128xf32>, vector<16x128xf32> -> vector<16x128xf32>
    %c0_11 = arith.constant 0 : index
    %c0_12 = arith.constant 0 : index
    %16 = vector.load %arg5[%c0_11, %c0_12] : memref<1x128xf32, #tpu.memory_space<vmem>>, vector<1x128xf32>
    %17 = vector.broadcast %16 : vector<1x128xf32> to vector<16x128xf32>
    %18 = arith.addf %15, %17 : vector<16x128xf32>
    %19 = arith.addf %18, %0 : vector<16x128xf32>
    %c0_13 = arith.constant 0 : index
    %c0_14 = arith.constant 0 : index
    %20 = vector.load %arg6[%c0_13, %c0_14] : memref<1x128xf32, #tpu.memory_space<vmem>>, vector<1x128xf32>
    %c0_15 = arith.constant 0 : index
    %c0_16 = arith.constant 0 : index
    %21 = vector.load %arg7[%c0_15, %c0_16] : memref<1x128xf32, #tpu.memory_space<vmem>>, vector<1x128xf32>
    %cst_17 = arith.constant dense<0.000000e+00> : vector<16xf32>
    %22 = vector.multi_reduction <add>, %19, %cst_17 [1] : vector<16x128xf32> to vector<16xf32>
    %23 = vector.shape_cast %22 : vector<16xf32> to vector<16x1xf32>
    %cst_18 = arith.constant 1.280000e+02 : f32
    %24 = vector.broadcast %cst_18 : f32 to vector<16x1xf32>
    %25 = arith.divf %23, %24 : vector<16x1xf32>
    %26 = vector.broadcast %25 : vector<16x1xf32> to vector<16x128xf32>
    %27 = arith.subf %19, %26 : vector<16x128xf32>
    %28 = vector.broadcast %25 : vector<16x1xf32> to vector<16x128xf32>
    %29 = arith.subf %19, %28 : vector<16x128xf32>
    %30 = arith.mulf %27, %29 : vector<16x128xf32>
    %cst_19 = arith.constant dense<0.000000e+00> : vector<16xf32>
    %31 = vector.multi_reduction <add>, %30, %cst_19 [1] : vector<16x128xf32> to vector<16xf32>
    %32 = vector.shape_cast %31 : vector<16xf32> to vector<16x1xf32>
    %cst_20 = arith.constant 1.280000e+02 : f32
    %33 = vector.broadcast %cst_20 : f32 to vector<16x1xf32>
    %34 = arith.divf %32, %33 : vector<16x1xf32>
    %35 = vector.broadcast %25 : vector<16x1xf32> to vector<16x128xf32>
    %36 = arith.subf %19, %35 : vector<16x128xf32>
    %cst_21 = arith.constant 9.99999974E-6 : f32
    %37 = vector.broadcast %cst_21 : f32 to vector<16x1xf32>
    %38 = arith.addf %34, %37 : vector<16x1xf32>
    %39 = math.rsqrt %38 : vector<16x1xf32>
    %40 = vector.broadcast %39 : vector<16x1xf32> to vector<16x128xf32>
    %41 = arith.mulf %36, %40 : vector<16x128xf32>
    %42 = vector.broadcast %20 : vector<1x128xf32> to vector<16x128xf32>
    %43 = arith.mulf %41, %42 : vector<16x128xf32>
    %44 = vector.broadcast %21 : vector<1x128xf32> to vector<16x128xf32>
    %45 = arith.addf %43, %44 : vector<16x128xf32>
    %c0_22 = arith.constant 0 : index
    %c0_23 = arith.constant 0 : index
    %46 = vector.load %arg8[%c0_22, %c0_23] : memref<16x128xf32, #tpu.memory_space<vmem>>, vector<16x128xf32>
    tpu.vector_store %arg8[%c0_22, %c0_23], %45 {strides = array<i32>} : memref<16x128xf32, #tpu.memory_space<vmem>>, vector<16x128xf32>,
    return
  }
  func.func @transform_0(%arg0: i32) -> (i32, i32) {
    %c0_i32 = arith.constant 0 : i32
    %c0_i32_0 = arith.constant 0 : i32
    return %arg0, %c0_i32 : i32, i32
  }
  func.func @transform_1(%arg0: i32) -> (i32, i32) {
    %c0_i32 = arith.constant 0 : i32
    %c0_i32_0 = arith.constant 0 : i32
    %c0_i32_1 = arith.constant 0 : i32
    return %c0_i32, %c0_i32_0 : i32, i32
  }
  func.func @transform_2(%arg0: i32) -> (i32, i32) {
    %c0_i32 = arith.constant 0 : i32
    %c0_i32_0 = arith.constant 0 : i32
    %c0_i32_1 = arith.constant 0 : i32
    return %c0_i32, %c0_i32_0 : i32, i32
  }
  func.func @transform_3(%arg0: i32) -> (i32, i32) {
    %c0_i32 = arith.constant 0 : i32
    %c0_i32_0 = arith.constant 0 : i32
    %c0_i32_1 = arith.constant 0 : i32
    return %c0_i32, %c0_i32_0 : i32, i32
  }
  func.func @transform_4(%arg0: i32) -> (i32, i32) {
    %c0_i32 = arith.constant 0 : i32
    %c0_i32_0 = arith.constant 0 : i32
    %c0_i32_1 = arith.constant 0 : i32
    return %c0_i32, %c0_i32_0 : i32, i32
  }
  func.func @transform_5(%arg0: i32) -> (i32, i32) {
    %c0_i32 = arith.constant 0 : i32
    %c0_i32_0 = arith.constant 0 : i32
    %c0_i32_1 = arith.constant 0 : i32
    return %c0_i32, %c0_i32_0 : i32, i32
  }
  func.func @transform_6(%arg0: i32) -> (i32, i32) {
    %c0_i32 = arith.constant 0 : i32
    %c0_i32_0 = arith.constant 0 : i32
    %c0_i32_1 = arith.constant 0 : i32
    return %c0_i32, %c0_i32_0 : i32, i32
  }
  func.func @transform_7(%arg0: i32) -> (i32, i32) {
    %c0_i32 = arith.constant 0 : i32
    %c0_i32_0 = arith.constant 0 : i32
    return %arg0, %c0_i32 : i32, i32
  }
}

</mosaic_0001>

<bundles_post_ra>
// kernel: position_wise_ffn.1
= control target key start
LH: loop header
LB: loop body
LE: loop exit
PB: predicated region body
PF: predicated region fallthrough
CT: control target
= control target key end

     0   :  { %12 = vsyncpa [#allocation3], 0  ;;  %s697_s0 = inlined_call_operand.vmem [shape: f32[16,128], index: 0, kind: input, shape index: {}]   ;;  %s698_s1 = inlined_call_operand.hbm [shape: f32[128,128], index: 1, kind: input, shape index: {}]   ;;  %s699_s2 = inlined_call_operand.vmem [shape: f32[1,128], index: 2, kind: input, shape index: {}]   ;;  %s700_s3 = inlined_call_operand.hbm [shape: f32[128,128], index: 3, kind: input, shape index: {}]   ;;  %s701_s4 = inlined_call_operand.vmem [shape: f32[1,128], index: 4, kind: input, shape index: {}]   ;;  %s702_s5 = inlined_call_operand.vmem [shape: f32[1,128], index: 5, kind: input, shape index: {}]   ;;  %s703_s6 = inlined_call_operand.vmem [shape: f32[1,128], index: 6, kind: input, shape index: {}]   ;;  %s704_s7 = inlined_call_operand.hbm [shape: f32[16,128], index: 7, kind: output, shape index: {}]  }
   0x1   :  { %13 = vsyncpa [#allocation6], 0 }
   0x2   :  { %14 = vsyncpa [#allocation4], 0  ;;  %s585_s24 = smov [#allocation2]   ;;  %s513_s28 = scalar_lea.hbm %s698_s1, 2048 }
   0x3   :  { %s22_s25 = sshll.u32 %s585_s24, 4  ;;  %p514_p0 = scmp.ne.s32.totalorder %s698_s1, %s513_s28  ;;  %s23_s25 = int_to_ptr.vmem [resolvable:$true] %s22_s25 }
   0x4   :  { %p517_p1 = scmp.lt.u32.totalorder %s513_s28, %s698_s1 }
   0x6   :  { %p519_p2 = pnand %p517_p1, %p514_p0 }
   0x8   :  { %522 = shalt.err (!%p519_p2)
}
   0x9   :  { %s523_s10 = scalar_lea.vmem %s23_s25, 2048  ;;  %p528_p4 = scmp.lt.s32.totalorder %s23_s25, %s23_s25 }
   0xa   :  { %p524_p3 = scmp.ne.s32.totalorder %s23_s25, %s523_s10  ;;  %p529_p5 = scmp.lt.s32.totalorder %s523_s10, %s523_s10 }
   0xc   :  { %p530_p6 = por %p529_p5, %p528_p4 }
   0xe   :  { %p531_p7 = pnand %p530_p6, %p524_p3 }
  0x10   :  { %534 = shalt.err (!%p531_p7)
}
  0x11   :  { %s586_s11 = smov 128   ;;  %s587_s12 = smov 8  }
  0x12   :  { %28 = dma.hbm_to_vmem [thread:$0]  %s698_s1, 2048, %s23_s25, [#allocation3], %s586_s11, %s586_s11, %s587_s12  }
  0x13   :  { %s588_s15 = smov [#allocation5]   ;;  %s535_s19 = scalar_lea.hbm %s700_s3, 2048 }
  0x14   :  { %s36_s16 = sshll.u32 %s588_s15, 4  ;;  %p536_p8 = scmp.ne.s32.totalorder %s700_s3, %s535_s19  ;;  %s37_s16 = int_to_ptr.vmem [resolvable:$true] %s36_s16 }
  0x15   :  { %p539_p9 = scmp.lt.u32.totalorder %s535_s19, %s700_s3 }
  0x17   :  { %p541_p10 = pnand %p539_p9, %p536_p8 }
  0x19   :  { %544 = shalt.err (!%p541_p10)
}
  0x1a   :  { %s545_s24 = scalar_lea.vmem %s37_s16, 2048  ;;  %p550_p12 = scmp.lt.s32.totalorder %s37_s16, %s37_s16 }
  0x1b   :  { %p546_p11 = scmp.ne.s32.totalorder %s37_s16, %s545_s24  ;;  %p551_p13 = scmp.lt.s32.totalorder %s545_s24, %s545_s24 }
  0x1d   :  { %p552_p0 = por %p551_p13, %p550_p12 }
  0x1f   :  { %p553_p1 = pnand %p552_p0, %p546_p11 }
  0x21   :  { %556 = shalt.err (!%p553_p1)
}
  0x22   :  { %42 = dma.hbm_to_vmem [thread:$0]  %s700_s3, 2048, %s37_s16, [#allocation6], %s586_s11, %s586_s11, %s587_s12  }
  0x23   :  { %579 = dma.done.wait [#allocation3], 2048  }
  0x24   :  { %580 = vsyncadd [#allocation3], 4294965248 }
  0x25   :  { %581 = dma.done.wait [#allocation6], 2048  }
  0x26   :  { %582 = vsyncadd [#allocation6], 4294965248  ;;  %v57_v0 = vld [vmem:[#allocation2] sm:$0xff]  ;;  %v58_v1 = vld [vmem:[#allocation2 + $0x8] sm:$0xff]  ;;  %s589_s13 = smov [#allocation7]  }
  0x27   :  { %v59_v2 = vld [vmem:[#allocation2 + $0x10] sm:$0xff]  ;;  %v436_v3 = vpack.c.bf16 %v58_v1, %v57_v0  ;;  %v60_v4 = vld [vmem:[#allocation2 + $0x18] sm:$0xff]  ;;  %v61_v6 = vld [vmem:[#allocation2 + $0x20] sm:$0xff]  ;;  %s313_s14 = sshll.u32 %s589_s13, 4  ;;  %s314_s14 = int_to_ptr.vmem [resolvable:$true] %s313_s14 }
  0x28   :  { %v440_v5 = vpack.c.bf16 %v60_v4, %v59_v2  ;;  %v62_v7 = vld [vmem:[#allocation2 + $0x28] sm:$0xff]  ;;  %v63_v9 = vld [vmem:[#allocation2 + $0x30] sm:$0xff]  ;;  %v64_v10 = vld [vmem:[#allocation2 + $0x38] sm:$0xff]  ;;  %s557_s15 = scalar_lea.vmem %s314_s14, 256  ;;  %p562_p3 = scmp.lt.s32.totalorder %s314_s14, %s314_s14 }
  0x29   :  { %437 = vmatprep.subr.bf16.mxu0 %v436_v3  ;;  %v444_v8 = vpack.c.bf16 %v62_v7, %v61_v6  ;;  %v663_v11 = vld [vmem:[%s697_s0] sm:$0xff]  ;;  %v166_v13 = vld [vmem:[#allocation5 + $0x8] sm:$0xff]  ;;  %v167_v14 = vld [vmem:[#allocation5 + $0x10] sm:$0xff]  ;;  %v448_v20 = vpack.c.bf16 %v64_v10, %v63_v9  ;;  %p558_p2 = scmp.ne.s32.totalorder %s314_s14, %s557_s15  ;;  %p563_p4 = scmp.lt.s32.totalorder %s557_s15, %s557_s15 }
  0x2a   :  { %439 = vmatpush3.bf16.msra.mxu0 %v436_v3  ;;  %398 = vmatprep.mubr.f32.mxu0 %v663_v11  ;;  %v165_v12 = vld [vmem:[#allocation5] sm:$0xff]  ;;  %v168_v16 = vld [vmem:[#allocation5 + $0x18] sm:$0xff]  ;;  %v170_v19 = vld [vmem:[#allocation5 + $0x28] sm:$0xff] }
  0x2b   :  { %441 = vmatprep.subr.bf16.mxu0 %v440_v5  ;;  %v468_v15 = vpack.c.bf16 %v166_v13, %v165_v12  ;;  %v472_v17 = vpack.c.bf16 %v168_v16, %v167_v14  ;;  %v169_v18 = vld [vmem:[#allocation5 + $0x20] sm:$0xff]  ;;  %v66_v22 = vld [vmem:[#allocation2 + $0x48] sm:$0xff]  ;;  %v67_v25 = vld [vmem:[#allocation2 + $0x50] sm:$0xff]  ;;  %p564_p5 = por %p563_p4, %p562_p3 }
  0x2c   :  { %v65_v21 = vld [vmem:[#allocation2 + $0x40] sm:$0xff]  ;;  %v476_v23 = vpack.c.bf16 %v170_v19, %v169_v18  ;;  %v68_v26 = vld [vmem:[#allocation2 + $0x58] sm:$0xff]  ;;  %v70_v29 = vld [vmem:[#allocation2 + $0x68] sm:$0xff] }
  0x2d   :  { %469 = vmatprep.subr.bf16.mxu1 %v468_v15  ;;  %v452_v24 = vpack.c.bf16 %v66_v22, %v65_v21  ;;  %v456_v27 = vpack.c.bf16 %v68_v26, %v67_v25  ;;  %v69_v28 = vld [vmem:[#allocation2 + $0x60] sm:$0xff]  ;;  %v71_v31 = vld [vmem:[#allocation2 + $0x70] sm:$0xff]  ;;  %v72_v32 = vld [vmem:[#allocation2 + $0x78] sm:$0xff]  ;;  %p565_p6 = pnand %p564_p5, %p558_p2 }
  0x2e   :  { %443 = vmatpush3.bf16.msra.mxu0 %v440_v5  ;;  %471 = vmatpush3.bf16.msra.mxu1 %v468_v15  ;;  %v460_v30 = vpack.c.bf16 %v70_v29, %v69_v28  ;;  %v464_v33 = vpack.c.bf16 %v72_v32, %v71_v31  ;;  %v56_v34 = vld [vmem:[%s697_s0 + $0x8] sm:$0xff]  ;;  %v171_v35 = vld [vmem:[#allocation5 + $0x30] sm:$0xff]  ;;  %v172_v36 = vld [vmem:[#allocation5 + $0x38] sm:$0xff] }
  0x2f   :  { %445 = vmatprep.subr.bf16.mxu0 %v444_v8  ;;  %473 = vmatprep.subr.bf16.mxu1 %v472_v17  ;;  %v480_v37 = vpack.c.bf16 %v172_v36, %v171_v35  ;;  %v173_v38 = vld [vmem:[#allocation5 + $0x40] sm:$0xff]  ;;  %v174_v39 = vld [vmem:[#allocation5 + $0x48] sm:$0xff]  ;;  %v175_v41 = vld [vmem:[#allocation5 + $0x50] sm:$0xff] }
  0x30   :  { %v484_v40 = vpack.c.bf16 %v174_v39, %v173_v38  ;;  %v176_v42 = vld [vmem:[#allocation5 + $0x58] sm:$0xff]  ;;  %v177_v44 = vld [vmem:[#allocation5 + $0x60] sm:$0xff]  ;;  %v178_v45 = vld [vmem:[#allocation5 + $0x68] sm:$0xff] }
  0x31   :  { %v488_v43 = vpack.c.bf16 %v176_v42, %v175_v41  ;;  %v492_v46 = vpack.c.bf16 %v178_v45, %v177_v44  ;;  %v179_v47 = vld [vmem:[#allocation5 + $0x70] sm:$0xff]  ;;  %v180_v48 = vld [vmem:[#allocation5 + $0x78] sm:$0xff]  ;;  %v326_v50 = vld [vmem:[%s699_s2] ss:$0 sm:$0xff] }
  0x32   :  { %447 = vmatpush3.bf16.msra.mxu0 %v444_v8  ;;  %475 = vmatpush3.bf16.msra.mxu1 %v472_v17  ;;  %v496_v49 = vpack.c.bf16 %v180_v48, %v179_v47  ;;  %v327_v1 = vld [vmem:[%s701_s4] ss:$0 sm:$0xff] }
  0x33   :  { %449 = vmatprep.subr.bf16.mxu0 %v448_v20  ;;  %477 = vmatprep.subr.bf16.mxu1 %v476_v23  ;;  %v329_v25 = vld [vmem:[%s703_s6] ss:$0 sm:$0xff] }
  0x36   :  { %451 = vmatpush3.bf16.msra.mxu0 %v448_v20  ;;  %479 = vmatpush3.bf16.msra.mxu1 %v476_v23  ;;  %v328_v23 = vld [vmem:[%s702_s5] ss:$0 sm:$0xff] }
  0x37   :  { %453 = vmatprep.subr.bf16.mxu0 %v452_v24  ;;  %481 = vmatprep.subr.bf16.mxu1 %v480_v37 }
  0x3a   :  { %455 = vmatpush3.bf16.msra.mxu0 %v452_v24  ;;  %483 = vmatpush3.bf16.msra.mxu1 %v480_v37 }
  0x3b   :  { %457 = vmatprep.subr.bf16.mxu0 %v456_v27  ;;  %485 = vmatprep.subr.bf16.mxu1 %v484_v40 }
  0x3e   :  { %459 = vmatpush3.bf16.msra.mxu0 %v456_v27  ;;  %487 = vmatpush3.bf16.msra.mxu1 %v484_v40 }
  0x3f   :  { %461 = vmatprep.subr.bf16.mxu0 %v460_v30  ;;  %489 = vmatprep.subr.bf16.mxu1 %v488_v43 }
  0x42   :  { %463 = vmatpush3.bf16.msra.mxu0 %v460_v30  ;;  %491 = vmatpush3.bf16.msra.mxu1 %v488_v43 }
  0x43   :  { %465 = vmatprep.subr.bf16.mxu0 %v464_v33  ;;  %493 = vmatprep.subr.bf16.mxu1 %v492_v46 }
  0x46   :  { %467 = vmatpush3.bf16.msra.mxu0 %v464_v33  ;;  %495 = vmatpush3.bf16.msra.mxu1 %v492_v46 }
  0x47   :  { %497 = vmatprep.subr.bf16.mxu1 %v496_v49 }
  0x49   :  { %399 = vmatmul.mubr.f32.vlgmr.msra.gmra.mrb[0].mxu0 %v56_v34 }
  0x4a   :  { %499 = vmatpush3.bf16.msra.mxu1 %v496_v49 }
 0x11c   :  { %v400_v51 = vpop.f32.mrb[0].mxu0 }
 0x11d   :  { %v152_v52 = vadd.f32 %v400_v51, %v326_v50  ;;  %v146_v53 = vpop.f32.mrb[1].mxu0 }
 0x11e   :  { %v147_v54 = vadd.f32 %v326_v50, %v146_v53 }
 0x11f   :  { %v158_v55 = vmul.f32 0.70710677, %v152_v52  ;;  %v156_v62 = vmul.f32 0.5, %v152_v52 }
 0x120   :  { %v157_v56 = vmul.f32 0.70710677, %v147_v54  ;;  %v155_v60 = vmul.f32 0.5, %v147_v54 }
 0x121   :  { %505 = verf.f32 %v158_v55 }
 0x122   :  { %507 = verf.f32 %v157_v56 }
 0x12b   :  { %v506_v57 = vpop.eup %505 }
 0x12c   :  { %v508_v58 = vpop.eup %507  ;;  %v162_v59 = vadd.f32 1.0, %v506_v57 }
 0x12d   :  { %v161_v61 = vadd.f32 1.0, %v508_v58 }
 0x12e   :  { %v164_v0 = vmul.f32 %v162_v59, %v156_v62 }
 0x12f   :  { %v163_v63 = vmul.f32 %v161_v61, %v155_v60 }
 0x131   :  { %433 = vmatprep.mubr.f32.mxu1 %v163_v63 }
 0x132   :  { %434 = vmatmul.mubr.f32.vlgmr.msra.gmra.mrb[0].mxu1 %v164_v0 }
 0x205   :  { %v435_v2 = vpop.f32.mrb[0].mxu1 }
 0x206   :  { %v254_v3 = vpop.f32.mrb[1].mxu1  ;;  %v260_v5 = vadd.f32 %v435_v2, %v327_v1 }
 0x207   :  { %v255_v4 = vadd.f32 %v327_v1, %v254_v3 }
 0x208   :  { %v264_v7 = vadd.f32 %v260_v5, %v56_v34 }
 0x209   :  { %v263_v6 = vadd.f32 %v255_v4, %v663_v11 }
 0x20b   :  { %267 = vadd.xlane.f32.xlu0 %v263_v6 }
 0x20f   :  { %269 = vadd.xlane.f32.xlu0 %v264_v7 }
 0x298   :  { %v268_v8 = vpop.xlane.xlu0 %267 }
 0x299   :  { %v272_v9 = vmul.f32 0.0078125, %v268_v8 }
 0x29b   :  { %v274_v10 = vsub.f32 %v263_v6, %v272_v9 }
 0x29c   :  { %v270_v12 = vpop.xlane.xlu0 %269 }
 0x29d   :  { %v273_v13 = vmul.f32 0.0078125, %v270_v12  ;;  %v276_v14 = vmul.f32 %v274_v10, %v274_v10 }
 0x29f   :  { %v275_v15 = vsub.f32 %v264_v7, %v273_v13  ;;  %278 = vadd.xlane.f32.xlu1 %v276_v14 }
 0x2a1   :  { %v277_v16 = vmul.f32 %v275_v15, %v275_v15 }
 0x2a3   :  { %280 = vadd.xlane.f32.xlu1 %v277_v16 }
 0x32c   :  { %v279_v17 = vpop.xlane.xlu1 %278 }
 0x32d   :  { %v282_v18 = vmul.f32 0.0078125, %v279_v17 }
 0x32f   :  { %v284_v19 = vadd.f32 1e-05, %v282_v18 }
 0x330   :  { %v281_v20 = vpop.xlane.xlu1 %280 }
 0x331   :  { %509 = vrsqrt.f32 %v284_v19  ;;  %v283_v21 = vmul.f32 0.0078125, %v281_v20 }
 0x333   :  { %v285_v11 = vadd.f32 1e-05, %v283_v21 }
 0x335   :  { %511 = vrsqrt.f32 %v285_v11 }
 0x33b   :  { %v510_v22 = vpop.eup %509 }
 0x33c   :  { %v288_v24 = vmul.f32 %v510_v22, %v274_v10 }
 0x33e   :  { %v296_v26 = vmul.f32 %v328_v23, %v288_v24 }
 0x33f   :  { %v512_v27 = vpop.eup %511 }
 0x340   :  { %v289_v28 = vmul.f32 %v512_v27, %v275_v15  ;;  %v304_v29 = vadd.f32 %v329_v25, %v296_v26 }
 0x342   :  { %v297_v30 = vmul.f32 %v328_v23, %v289_v28  ;;  %306 = vst [vmem:[#allocation7] sm:$0xff] %v304_v29 }
 0x344   :  { %v305_v31 = vadd.f32 %v329_v25, %v297_v30 }
 0x346   :  { %307 = vst [vmem:[#allocation7 + $0x8] sm:$0xff] %v305_v31 }
 0x347   :  { %568 = shalt.err (!%p565_p6)
}
 0x348   :  { %s569_s16 = scalar_lea.hbm %s704_s7, 256 }
 0x349   :  { %p570_p7 = scmp.ne.s32.totalorder %s704_s7, %s569_s16  ;;  %p573_p8 = scmp.lt.u32.totalorder %s569_s16, %s704_s7 }
 0x34b   :  { %p575_p9 = pnand %p573_p8, %p570_p7 }
 0x34d   :  { %578 = shalt.err (!%p575_p9)
}
 0x34e   :  { %319 = dma.vmem_to_hbm [thread:$0]  %s314_s14, 256, %s704_s7, [#allocation4], %s586_s11, %s586_s11, %s587_s12  }
 0x34f   :  { %583 = dma.done.wait [#allocation4], 256  }
 0x350   :  { %584 = vsyncadd [#allocation4], 4294967040 }
 0x351   :  { %323 = vsyncpa [#allocation3], 1 }
 0x352   :  { %324 = vsyncpa [#allocation6], 1 }
 0x353   :  { %325 = vsyncpa [#allocation4], 1 }

</bundles_post_ra>
